<compile_context>
chip_gen: v6e
topology: v6e:2x2x1
jax: 0.10.0
libtpu: 0.0.40
codegen_flags: <defaults>
</compile_context>

<pallas_src>
import functools
import math

import jax
import jax.numpy as jnp
import numpy as np
from jax import lax
from jax.experimental import pallas as pl
from jax.experimental.pallas import tpu as pltpu

_MASK_BIAS = -1000000000.0   # matches the PyTorch module's masked_fill value


# --------------------------------------------------------------------------- #
# Kernel
# --------------------------------------------------------------------------- #
def _sdpa_kernel(scale, apply_mask, q_ref, k_ref, v_ref, bias_ref, out_ref,
                 *attn_refs):
    # q_ref:    (1, Hb, Tq, Dk)   k_ref: (1, Hb, S, Dk)   v_ref: (1, Hb, S, Dv)
    # bias_ref: (1, 1, S) f32     out_ref: (1, Hb, Tq, Dv)
    # attn_refs: optionally ((1, Hb, Tq, S),)
    q = q_ref[0] * scale                     # fold softmax scale into q (small tensor)
    k = k_ref[0]
    v = v_ref[0]

    # scores[h, i, j] = sum_d q[h, i, d] * k[h, j, d]  (contract last dims, no transpose)
    s = lax.dot_general(
        q, k,
        dimension_numbers=(((2,), (2,)), ((0,), (0,))),
        preferred_element_type=jnp.float32,
    )                                                    # (Hb, Tq, S) f32

    if apply_mask:
        s = s + bias_ref[0][None]                        # additive mask bias (0 / -1e9)

    # numerically stable softmax over keys; keep at most one full-size f32 temp live
    s = s - jnp.max(s, axis=-1, keepdims=True)
    p = jnp.exp(s)                                       # (Hb, Tq, S) f32
    denom = jnp.sum(p, axis=-1, keepdims=True)           # (Hb, Tq, 1)  f32
    inv = pl.reciprocal(denom, approx=False)             # exact; tiny tensor
    probs = (p * inv).astype(v.dtype)                    # normalized attention weights

    # dropout(p=0.0) is the identity in eval mode.
    # TODO(synk): dropout with p > 0 would need pltpu.prng_seed / prng_random_bits.

    out = lax.dot_general(
        probs, v,
        dimension_numbers=(((2,), (1,)), ((0,), (0,))),
        preferred_element_type=jnp.float32,
    )                                                    # (Hb, Tq, Dv) f32 acc
    # TODO(synk): for Dv < 128 a lane-dense (Tq, Hb*Dv) output slab would avoid
    # masked partial stores; left as-is since the attn writeback dominates when used.
    out_ref[0] = out.astype(out_ref.dtype)

    if attn_refs:
        attn_refs[0][0] = probs.astype(attn_refs[0].dtype)


# --------------------------------------------------------------------------- #
# Tiling selection
# --------------------------------------------------------------------------- #
def _round_up(x, m):
    return ((x + m - 1) // m) * m


def _vmem_capacity_bytes():
    try:
        return int(pltpu.get_tpu_info().vmem_capacity_bytes)
    except Exception:
        return 64 * 1024 * 1024       # conservative default (v7x per-TensorCore VMEM)


def _seq_tiling(S):
    """Return (padded_S, candidate query-tile sizes, best first)."""
    if S <= 256:
        return S, [S]                  # single query tile, no padding
    Sp = _round_up(S, 128)
    return Sp, [t for t in (512, 256, 128) if Sp % t == 0]


def _select_tiles(H, S, Dk, Dv, itemsize, return_attn, budget):
    """Pick (padded_S, Tq, Hb): grow Tq before Hb, keep double-buffered blocks plus
    ~3 live f32 (Hb, Tq, S) temporaries under the per-step VMEM budget."""
    Sp, tq_cands = _seq_tiling(S)
    head_divs = [d for d in range(H, 0, -1) if H % d == 0]
    for tq in tq_cands:
        for hb in head_divs:
            blocks = (hb * tq * Dk + hb * Sp * (Dk + Dv)) * itemsize + Sp * 4
            blocks += hb * tq * Dv * itemsize
            if return_attn:
                blocks += hb * tq * Sp * itemsize
            live_f32 = 3 * hb * tq * Sp * 4
            if 2 * blocks + live_f32 <= budget:
                return Sp, tq, hb
    # TODO(synk): extremely long sequences would want a flash-style online softmax
    # split over keys instead of this single-pass fallback.
    return Sp, tq_cands[-1], 1


# --------------------------------------------------------------------------- #
# Wrapper
# --------------------------------------------------------------------------- #
def scaled_dot_product_attention(q, k, v, mask=None, return_attn=True):
    """q, k: (B, H, S, Dk); v: (B, H, S, Dv); mask: (B,1,1,S), (1,1,1,S) or None.
    Returns (output (B,H,S,Dv), attn (B,H,S,S) or None) like the PyTorch module."""
    B, H, S, Dk = q.shape
    Dv = v.shape[-1]
    scale = 1.0 / math.sqrt(Dk)               # compile-time Python float

    # Additive key bias computed once in the wrapper (0 keep / -1e9 masked).
    if mask is None:
        bias = jnp.zeros((B, 1, S), jnp.float32)
        apply_mask = False
    else:
        m = jnp.broadcast_to(mask, (B, 1, 1, S)).reshape(B, 1, S)
        bias = jnp.where(m == 0, jnp.float32(_MASK_BIAS), jnp.float32(0.0))
        apply_mask = True

    vmem_cap = _vmem_capacity_bytes()
    budget = int(0.55 * vmem_cap)
    Sp, Tq, Hb = _select_tiles(H, S, Dk, Dv, q.dtype.itemsize, return_attn, budget)

    if Sp != S:                                # pad ragged sequence lengths
        pad = Sp - S
        q = jnp.pad(q, ((0, 0), (0, 0), (0, pad), (0, 0)))
        k = jnp.pad(k, ((0, 0), (0, 0), (0, pad), (0, 0)))
        v = jnp.pad(v, ((0, 0), (0, 0), (0, pad), (0, 0)))
        bias = jnp.pad(bias, ((0, 0), (0, 0), (0, pad)),
                       constant_values=_MASK_BIAS)        # never attend to padding
        apply_mask = True

    kernel = functools.partial(_sdpa_kernel, scale, apply_mask)
    grid = (B, H // Hb, Sp // Tq)

    out_shapes = [jax.ShapeDtypeStruct((B, H, Sp, Dv), q.dtype)]
    out_specs = [pl.BlockSpec((1, Hb, Tq, Dv), lambda b, h, qi: (b, h, qi, 0))]
    if return_attn:
        out_shapes.append(jax.ShapeDtypeStruct((B, H, Sp, Sp), q.dtype))
        out_specs.append(pl.BlockSpec((1, Hb, Tq, Sp), lambda b, h, qi: (b, h, qi, 0)))

    flops = 2 * B * H * Sp * Sp * (Dk + Dv)
    bytes_accessed = (int(q.size) + int(k.size) + int(v.size)) * q.dtype.itemsize
    bytes_accessed += int(bias.size) * 4
    bytes_accessed += B * H * Sp * Dv * q.dtype.itemsize
    if return_attn:
        bytes_accessed += B * H * Sp * Sp * q.dtype.itemsize

    results = pl.pallas_call(
        kernel,
        out_shape=tuple(out_shapes),
        grid_spec=pltpu.PrefetchScalarGridSpec(
            num_scalar_prefetch=0,
            grid=grid,
            in_specs=[
                pl.BlockSpec((1, Hb, Tq, Dk), lambda b, h, qi: (b, h, qi, 0)),
                pl.BlockSpec((1, Hb, Sp, Dk), lambda b, h, qi: (b, h, 0, 0)),
                pl.BlockSpec((1, Hb, Sp, Dv), lambda b, h, qi: (b, h, 0, 0)),
                pl.BlockSpec((1, 1, Sp), lambda b, h, qi: (b, 0, 0)),
            ],
            out_specs=out_specs,
        ),
        compiler_params=pltpu.CompilerParams(
            # K/V index maps don't depend on qi -> keep qi sequential ("arbitrary")
            # so consecutive query tiles reuse the K/V blocks; megacore shards B/H.
            dimension_semantics=("parallel", "parallel", "arbitrary"),
            vmem_limit_bytes=int(0.9 * vmem_cap),
        ),
        cost_estimate=pl.CostEstimate(
            flops=flops,
            transcendentals=B * H * Sp * Sp,
            bytes_accessed=bytes_accessed,
        ),
    )(q, k, v, bias)

    out = results[0]
    attn = results[1] if return_attn else None
    if Sp != S:
        out = out[:, :, :S, :]
        if attn is not None:
            attn = attn[:, :, :S, :S]
    return out, attn


# --------------------------------------------------------------------------- #
# float64 NumPy reference (exact, backend-independent)
# --------------------------------------------------------------------------- #
def _reference_np(q, k, v, mask):
    q = np.asarray(q, np.float64)
    k = np.asarray(k, np.float64)
    v = np.asarray(v, np.float64)
    dk = q.shape[-1]
    scores = np.einsum("bhqd,bhkd->bhqk", q, k) / math.sqrt(dk)
    if mask is not None:
        scores = np.where(np.asarray(mask) == 0, _MASK_BIAS, scores)
    scores = scores - scores.max(axis=-1, keepdims=True)
    p = np.exp(scores)
    attn = p / p.sum(axis=-1, keepdims=True)
    out = np.einsum("bhqk,bhkd->bhqd", attn, v)
    return out, attn


if __name__ == "__main__":
    B, H, S, Dk, Dv = 2, 4, 8, 32, 32

    key = jax.random.PRNGKey(0)
    kq, kk, kv = jax.random.split(key, 3)
    q = jax.random.normal(kq, (B, H, S, Dk), dtype=jnp.float32)
    k = jax.random.normal(kk, (B, H, S, Dk), dtype=jnp.float32)
    v = jax.random.normal(kv, (B, H, S, Dv), dtype=jnp.float32)
    # mask out the last two key positions (mask == 0 -> -1e9 before softmax)
    mask = (jnp.arange(S) < S - 2).astype(jnp.int32).reshape(1, 1, 1, S)
    mask = jnp.broadcast_to(mask, (B, 1, 1, S))

    out, attn = scaled_dot_product_attention(q, k, v, mask)
    out = jax.block_until_ready(out)
    attn = jax.block_until_ready(attn)

    ref_out, ref_attn = _reference_np(q, k, v, mask)
    # Tolerance covers worst-case MXU rounding of f32 operands.
    assert np.allclose(np.asarray(out, np.float64), ref_out,
                       atol=5e-3, rtol=5e-3), "output mismatch"
    assert np.allclose(np.asarray(attn, np.float64), ref_attn,
                       atol=5e-3, rtol=5e-3), "attention mismatch"

    # No-mask path without the O(S^2) attn writeback.
    out2, attn2 = scaled_dot_product_attention(q, k, v, mask=None, return_attn=False)
    out2 = jax.block_until_ready(out2)
    ref_out2, _ = _reference_np(q, k, v, None)
    assert attn2 is None
    assert np.allclose(np.asarray(out2, np.float64), ref_out2,
                       atol=5e-3, rtol=5e-3), "no-mask output mismatch"

    print("KERNEL_OK")
</pallas_src>

<mosaic_0001>
module attributes {stable_mosaic.version = 11 : i64} {
  func.func @_sdpa_kernel(%arg0: i32, %arg1: i32, %arg2: i32, %arg3: memref<1x4x8x32xf32, #tpu.memory_space<vmem>>, %arg4: memref<1x4x8x32xf32, #tpu.memory_space<vmem>>, %arg5: memref<1x4x8x32xf32, #tpu.memory_space<vmem>>, %arg6: memref<1x1x8xf32, #tpu.memory_space<vmem>>, %arg7: memref<1x4x8x32xf32, #tpu.memory_space<vmem>>, %arg8: memref<1x4x8x8xf32, #tpu.memory_space<vmem>>) attributes {dimension_semantics = [#tpu.dimension_semantics<parallel>, #tpu.dimension_semantics<parallel>, #tpu.dimension_semantics<arbitrary>], iteration_bounds = array<i64: 2, 1, 1>, scalar_prefetch = 0 : i64, scratch_operands = 0 : i64, tpu.core_type = #tpu.core_type<tc>, window_params = [{transform_indices = @transform_0, window_bounds = array<i64: 1, 4, 8, 32>}, {transform_indices = @transform_1, window_bounds = array<i64: 1, 4, 8, 32>}, {transform_indices = @transform_2, window_bounds = array<i64: 1, 4, 8, 32>}, {transform_indices = @transform_3, window_bounds = array<i64: 1, 1, 8>}, {transform_indices = @transform_4, window_bounds = array<i64: 1, 4, 8, 32>}, {transform_indices = @transform_5, window_bounds = array<i64: 1, 4, 8, 8>}]} {
    %c0 = arith.constant 0 : index
    %c0_0 = arith.constant 0 : index
    %c0_1 = arith.constant 0 : index
    %c0_2 = arith.constant 0 : index
    %0 = vector.load %arg3[%c0, %c0_0, %c0_1, %c0_2] : memref<1x4x8x32xf32, #tpu.memory_space<vmem>>, vector<1x4x8x32xf32>
    %1 = vector.shape_cast %0 : vector<1x4x8x32xf32> to vector<4x8x32xf32>
    %cst = arith.constant 0.176776692 : f32
    %2 = vector.broadcast %cst : f32 to vector<4x8x32xf32>
    %3 = arith.mulf %1, %2 : vector<4x8x32xf32>
    %c0_3 = arith.constant 0 : index
    %c0_4 = arith.constant 0 : index
    %c0_5 = arith.constant 0 : index
    %c0_6 = arith.constant 0 : index
    %4 = vector.load %arg4[%c0_3, %c0_4, %c0_5, %c0_6] : memref<1x4x8x32xf32, #tpu.memory_space<vmem>>, vector<1x4x8x32xf32>
    %5 = vector.shape_cast %4 : vector<1x4x8x32xf32> to vector<4x8x32xf32>
    %c0_7 = arith.constant 0 : index
    %c0_8 = arith.constant 0 : index
    %c0_9 = arith.constant 0 : index
    %c0_10 = arith.constant 0 : index
    %6 = vector.load %arg5[%c0_7, %c0_8, %c0_9, %c0_10] : memref<1x4x8x32xf32, #tpu.memory_space<vmem>>, vector<1x4x8x32xf32>
    %7 = vector.shape_cast %6 : vector<1x4x8x32xf32> to vector<4x8x32xf32>
    %cst_11 = arith.constant dense<0.000000e+00> : vector<4x8x8xf32>
    %8 = tpu.matmul %3, %5, %cst_11 {dimension_numbers = #tpu.dot_dimension_numbers<[2], [2], [1], [1], [0, 0, 0, 1, 1, 1], [0], [0]>} : vector<4x8x32xf32>, vector<4x8x32xf32>, vector<4x8x8xf32> -> vector<4x8x8xf32>
    %c0_12 = arith.constant 0 : index
    %c0_13 = arith.constant 0 : index
    %c0_14 = arith.constant 0 : index
    %9 = vector.load %arg6[%c0_12, %c0_13, %c0_14] : memref<1x1x8xf32, #tpu.memory_space<vmem>>, vector<1x1x8xf32>
    %10 = vector.shape_cast %9 : vector<1x1x8xf32> to vector<1x8xf32>
    %11 = vector.shape_cast %10 : vector<1x8xf32> to vector<1x1x8xf32>
    %12 = vector.broadcast %11 : vector<1x1x8xf32> to vector<4x8x8xf32>
    %13 = arith.addf %8, %12 : vector<4x8x8xf32>
    %cst_15 = arith.constant dense<0xFF800000> : vector<4x8xf32>
    %14 = vector.multi_reduction <maximumf>, %13, %cst_15 [2] : vector<4x8x8xf32> to vector<4x8xf32>
    %15 = vector.shape_cast %14 : vector<4x8xf32> to vector<4x8x1xf32>
    %16 = vector.broadcast %15 : vector<4x8x1xf32> to vector<4x8x8xf32>
    %17 = arith.subf %13, %16 : vector<4x8x8xf32>
    %18 = math.exp %17 : vector<4x8x8xf32>
    %cst_16 = arith.constant dense<0.000000e+00> : vector<4x8xf32>
    %19 = vector.multi_reduction <add>, %18, %cst_16 [2] : vector<4x8x8xf32> to vector<4x8xf32>
    %20 = vector.shape_cast %19 : vector<4x8xf32> to vector<4x8x1xf32>
    %21 = tpu.reciprocal %20 : vector<4x8x1xf32> -> vector<4x8x1xf32>
    %22 = vector.broadcast %21 : vector<4x8x1xf32> to vector<4x8x8xf32>
    %23 = arith.mulf %18, %22 : vector<4x8x8xf32>
    %cst_17 = arith.constant dense<0.000000e+00> : vector<4x8x32xf32>
    %24 = tpu.matmul %23, %7, %cst_17 {dimension_numbers = #tpu.dot_dimension_numbers<[2], [1], [1], [2], [0, 0, 0, 1, 1, 2], [0], [0]>} : vector<4x8x8xf32>, vector<4x8x32xf32>, vector<4x8x32xf32> -> vector<4x8x32xf32>
    %c0_18 = arith.constant 0 : index
    %c0_19 = arith.constant 0 : index
    %c0_20 = arith.constant 0 : index
    %c0_21 = arith.constant 0 : index
    %25 = vector.load %arg7[%c0_18, %c0_19, %c0_20, %c0_21] : memref<1x4x8x32xf32, #tpu.memory_space<vmem>>, vector<1x4x8x32xf32>
    %26 = vector.shape_cast %25 : vector<1x4x8x32xf32> to vector<4x8x32xf32>
    %27 = vector.shape_cast %24 : vector<4x8x32xf32> to vector<1x4x8x32xf32>
    tpu.vector_store %arg7[%c0_18, %c0_19, %c0_20, %c0_21], %27 {strides = array<i32>} : memref<1x4x8x32xf32, #tpu.memory_space<vmem>>, vector<1x4x8x32xf32>,
    %c0_22 = arith.constant 0 : index
    %c0_23 = arith.constant 0 : index
    %c0_24 = arith.constant 0 : index
    %c0_25 = arith.constant 0 : index
    %28 = vector.load %arg8[%c0_22, %c0_23, %c0_24, %c0_25] : memref<1x4x8x8xf32, #tpu.memory_space<vmem>>, vector<1x4x8x8xf32>
    %29 = vector.shape_cast %28 : vector<1x4x8x8xf32> to vector<4x8x8xf32>
    %30 = vector.shape_cast %23 : vector<4x8x8xf32> to vector<1x4x8x8xf32>
    tpu.vector_store %arg8[%c0_22, %c0_23, %c0_24, %c0_25], %30 {strides = array<i32>} : memref<1x4x8x8xf32, #tpu.memory_space<vmem>>, vector<1x4x8x8xf32>,
    return
  }
  func.func @transform_0(%arg0: i32, %arg1: i32, %arg2: i32) -> (i32, i32, i32, i32) {
    %c0_i32 = arith.constant 0 : i32
    %c0_i32_0 = arith.constant 0 : i32
    return %arg0, %arg1, %arg2, %c0_i32 : i32, i32, i32, i32
  }
  func.func @transform_1(%arg0: i32, %arg1: i32, %arg2: i32) -> (i32, i32, i32, i32) {
    %c0_i32 = arith.constant 0 : i32
    %c0_i32_0 = arith.constant 0 : i32
    %c0_i32_1 = arith.constant 0 : i32
    return %arg0, %arg1, %c0_i32, %c0_i32_0 : i32, i32, i32, i32
  }
  func.func @transform_2(%arg0: i32, %arg1: i32, %arg2: i32) -> (i32, i32, i32, i32) {
    %c0_i32 = arith.constant 0 : i32
    %c0_i32_0 = arith.constant 0 : i32
    %c0_i32_1 = arith.constant 0 : i32
    return %arg0, %arg1, %c0_i32, %c0_i32_0 : i32, i32, i32, i32
  }
  func.func @transform_3(%arg0: i32, %arg1: i32, %arg2: i32) -> (i32, i32, i32) {
    %c0_i32 = arith.constant 0 : i32
    %c0_i32_0 = arith.constant 0 : i32
    %c0_i32_1 = arith.constant 0 : i32
    return %arg0, %c0_i32, %c0_i32_0 : i32, i32, i32
  }
  func.func @transform_4(%arg0: i32, %arg1: i32, %arg2: i32) -> (i32, i32, i32, i32) {
    %c0_i32 = arith.constant 0 : i32
    %c0_i32_0 = arith.constant 0 : i32
    return %arg0, %arg1, %arg2, %c0_i32 : i32, i32, i32, i32
  }
  func.func @transform_5(%arg0: i32, %arg1: i32, %arg2: i32) -> (i32, i32, i32, i32) {
    %c0_i32 = arith.constant 0 : i32
    %c0_i32_0 = arith.constant 0 : i32
    return %arg0, %arg1, %arg2, %c0_i32 : i32, i32, i32, i32
  }
}

</mosaic_0001>

<bundles_post_ra>
// kernel: tpu_custom_call.1
= control target key start
LH: loop header
LB: loop body
LE: loop exit
PB: predicated region body
PF: predicated region fallthrough
CT: control target
= control target key end

     0   :  { %s2050_s0 = inlined_call_operand.hbm [shape: f32[2,4,8,32], index: 0, kind: input, shape index: {}]   ;;  %s2051_s1 = inlined_call_operand.hbm [shape: f32[2,4,8,32], index: 1, kind: input, shape index: {}]   ;;  %s2052_s2 = inlined_call_operand.hbm [shape: f32[2,4,8,32], index: 2, kind: input, shape index: {}]   ;;  %s2053_s3 = inlined_call_operand.vmem [shape: f32[2,1,8], index: 3, kind: input, shape index: {}]   ;;  %s2054_s4 = inlined_call_operand.hbm [shape: f32[2,4,8,32], index: 4, kind: output, shape index: {0}]   ;;  %s2055_s5 = inlined_call_operand.hbm [shape: f32[2,4,8,8], index: 5, kind: output, shape index: {1}]  }
   0x1   :  { %2063 = sst [smem:[#allocation20_spill]] %s2051_s1 }
   0x2   :  { %11 = vsyncpa [#allocation3], 0 }
   0x3   :  { %13 = vsyncpa [#allocation3 + $0x1], 0 }
   0x4   :  { %14 = vsyncpa [#allocation6], 0 }
   0x5   :  { %16 = vsyncpa [#allocation6 + $0x1], 0 }
   0x6   :  { %17 = vsyncpa [#allocation4], 0 }
   0x7   :  { %19 = vsyncpa [#allocation4 + $0x1], 0 }
   0x8   :  { %20 = vsyncpa [#allocation10], 0 }
   0x9   :  { %22 = vsyncpa [#allocation10 + $0x1], 0  ;;  %s1733_s18 = smov 0   ;;  %s1735_s19 = smov 0  }
   0xa   :  { %s1737_s20 = smov 0   ;;  %s1739_s21 = smov 0  }
   0xb   :  { %s1741_s22 = smov 0   ;;  %s1743_s23 = smov 0  }
   0xc LB: > { %2064 = sst [smem:[#allocation15_spill]] %s1670_s18  ;;  %s1764_s24 = sadd.s32 4294967295, %s1690_s23   ;;  %s1690_s23 = sphi %s1743_s23, %s28_s23   ;;  %s1686_s22 = sphi %s1741_s22, %s2083_s22   ;;  %s1682_s21 = sphi %s1739_s21, %s2082_s21   ;;  %s1678_s20 = sphi %s1737_s20, %s2086_s20   ;;  %s1674_s19 = sphi %s1735_s19, %s2085_s19   ;;  %s1670_s18 = sphi %s1733_s18, %s2084_s18  }
   0xd   : > { %2065 = sst [smem:[#allocation16_spill]] %s1686_s22  ;;  %s1293_s25 = sadd.s32 4294967294, %s1690_s23  }
   0xe   : > { %s47_s26 = sadd.s32 1, %s1686_s22  ;;  %s58_s27 = sadd.s32 1, %s1678_s20 }
   0xf   : > { %p49_p0 = scmp.ge.s32.totalorder %s47_s26, 2  ;;  %p65_p1 = scmp.ne.s32.totalorder %s1678_s20, %s1674_s19 }
  0x10   : > { %p66_p2 = scmp.eq.s32.totalorder %s1690_s23, 0  ;;  %p71_p3 = scmp.ne.s32.totalorder %s1674_s19, %s1670_s18 }
  0x11   : > { %s2088_s26 = smov (%p49_p0, %s47_s26), 0  ;;  %p72_p5 = scmp.eq.s32.totalorder %s1764_s24, 0 }
  0x12   : > { %2066 = sst [smem:[#allocation17_spill]] %s2088_s26  ;;  %p1776_p4 = por %p66_p2, %p65_p1 }
  0x13   : > { %s51_s29 = ssub.s32 %s1686_s22, %s2088_s26  ;;  %p181_p6 = scmp.eq.s32.totalorder %s1764_s24, 1 }
  0x14   : > { %p56_p7 = scmp.eq.s32.totalorder %s51_s29, 0  ;;  %p1784_p8 = por %p72_p5, %p71_p3 }
  0x15   : > { %p1788_p9 = por %p181_p6, %p65_p1  ;;  %p187_p10 = scmp.eq.s32.totalorder %s1293_s25, 1 }
  0x16   : > { %s1793_s7 = scalar_select %p56_p7, %s1678_s20, %s58_s27  }
  0x17   : > { %p1795_p11 = por %p187_p10, %p71_p3  ;;  %p1420_p13 = scmp.lt.s32.totalorder %s1690_s23, 2 }
  0x18   : > { %2070 = sst [smem:[#allocation18_spill]] %s1793_s7  ;;  %s2056_s9 = sand.u32 1, %s1678_s20  }
  0x19   : > { %s2071_s8 = scalar_select %p1795_p11, 1, 0 }
  0x1a   : > { %s1804_s10 = sshll.u32 %s2056_s9, 5  ;;  %s1807_s11 = sshll.u32 %s1686_s22, 9 }
  0x1b   : > { %2072 = sst [smem:[#allocation19_spill]] %s2071_s8  ;;  %p1811_p0 = pnand %p1420_p13, %p1776_p4 }
  0x1c   : > { %s261_s13 = sand.u32 1, %s1690_s23   ;;  %s2074_s1 = sld [smem:[#allocation20_spill]] }
  0x1d   : > { %s265_s17 = scalar_lea.vmem [#allocation5], %s1804_s10  ;;  %p1305_p1 = scmp.ge.s32.totalorder %s1690_s23, 1 }
  0x1e   : > { %s274_s25 = sshll.u32 %s265_s17, 4  ;;  %p311_p2 = scmp.lt.s32.totalorder %s1690_s23, 3  ;;  %s275_s25 = int_to_ptr.vmem [resolvable:$true] %s274_s25 }
  0x1f   : > { %s1823_s27 = scalar_lea.sflag [#allocation6], %s261_s13  ;;  %p1494_p3 = pneg %p1811_p0 }
  0x20   : > { %s1505_s28 = scalar_lea.vmem %s275_s25, 512  ;;  %s1692_s29 = smov [#allocation5]  }
  0x21   : > { %p1506_p4 = scmp.ne.s32.totalorder %s275_s25, %s1505_s28  ;;  %s1510_s9 = sshll.u32 %s1692_s29, 4  ;;  %s1511_s9 = int_to_ptr.vmem [resolvable:$false] %s1510_s9 }
  0x22   : > { %s273_s16 = scalar_lea.hbm %s2074_s1, %s1807_s11  ;;  %s1512_s14 = scalar_lea.vmem %s1511_s9, 1024 }
  0x23   : > { %p1508_p5 = pnand %p1506_p4, %p1494_p3  ;;  %p1513_p7 = scmp.lt.s32.totalorder %s275_s25, %s1511_s9 }
  0x24   : > { %p1514_p10 = scmp.lt.s32.totalorder %s1512_s14, %s1505_s28 }
  0x25   : > { %p1509_p6 = pneg %p1508_p5 }
  0x26   : > { %p1515_p13 = por %p1514_p10, %p1513_p7 }
  0x28   : > { %p1516_p12 = pnand %p1515_p13, %p1509_p6 }
  0x2a   : > { %1519 = shalt.err (!%p1516_p12)
}
  0x2b   : > { %s2061_s15 = smov 128   ;;  %s1694_s13 = smov 8  }
  0x2c   : > { %1409 = dma.hbm_to_vmem [thread:$0]  (!%p1811_p0), %s273_s16, 512, %s275_s25, %s1823_s27, %s2061_s15, %s2061_s15, %s1694_s13  }
  0x2d   : > { %p1840_p4 = pnand %p1305_p1, %p311_p2  ;;  %s250_s29 = scalar_lea.hbm %s2050_s0, %s1807_s11 }
  0x2e   : > { %s241_s14 = scalar_lea.vmem [#allocation2], %s1804_s10  ;;  %s296_s7 = scalar_lea.hbm %s2052_s2, %s1807_s11 }
  0x2f   : > { %s251_s1 = sshll.u32 %s241_s14, 4  ;;  %s2076_s8 = sand.u32 1, %s1678_s20   ;;  %s252_s1 = int_to_ptr.vmem [resolvable:$true] %s251_s1 }
  0x30   : > { %s238_s18 = scalar_lea.sflag [#allocation3], %s2076_s8  ;;  %s1533_s16 = scalar_lea.vmem %s252_s1, 512 }
  0x31   : > { %p1534_p12 = scmp.ne.s32.totalorder %s252_s1, %s1533_s16  ;;  %s1695_s25 = smov [#allocation2]  }
  0x32   : > { %s1538_s15 = sshll.u32 %s1695_s25, 4  ;;  %s1539_s15 = int_to_ptr.vmem [resolvable:$false] %s1538_s15 }
  0x33   : > { %p1536_p1 = pnand %p1534_p12, %p1494_p3  ;;  %s1540_s17 = scalar_lea.vmem %s1539_s15, 1024 }
  0x34   : > { %p1541_p5 = scmp.lt.s32.totalorder %s252_s1, %s1539_s15  ;;  %p1542_p6 = scmp.lt.s32.totalorder %s1540_s17, %s1533_s16 }
  0x35   : > { %p1537_p2 = pneg %p1536_p1 }
  0x36   : > { %p1543_p7 = por %p1542_p6, %p1541_p5 }
  0x38   : > { %p1544_p10 = pnand %p1543_p7, %p1537_p2 }
  0x3a   : > { %1547 = shalt.err (!%p1544_p10)
}
  0x3b   : > { %s2077_s22 = smov 128   ;;  %s288_s26 = scalar_lea.vmem [#allocation7], %s1804_s10 }
  0x3c   : > { %1406 = dma.hbm_to_vmem [thread:$0]  (!%p1811_p0), %s250_s29, 512, %s252_s1, %s238_s18, %s2077_s22, %s2077_s22, %s1694_s13  }
  0x3d   : > { %s297_s8 = sshll.u32 %s288_s26, 4  ;;  %s1696_s15 = smov [#allocation7]   ;;  %s298_s8 = int_to_ptr.vmem [resolvable:$true] %s297_s8 }
  0x3e   : > { %s1561_s28 = scalar_lea.vmem %s298_s8, 512  ;;  %s1566_s14 = sshll.u32 %s1696_s15, 4  ;;  %s1567_s14 = int_to_ptr.vmem [resolvable:$false] %s1566_s14 }
  0x3f   : > { %p1562_p13 = scmp.ne.s32.totalorder %s298_s8, %s1561_s28  ;;  %s1568_s16 = scalar_lea.vmem %s1567_s14, 1024 }
  0x40   : > { %p1569_p2 = scmp.lt.s32.totalorder %s298_s8, %s1567_s14  ;;  %p1570_p5 = scmp.lt.s32.totalorder %s1568_s16, %s1561_s28 }
  0x41   : > { %p1564_p12 = pnand %p1562_p13, %p1494_p3 }
  0x42   : > { %p1571_p6 = por %p1570_p5, %p1569_p2 }
  0x43   : > { %p1565_p1 = pneg %p1564_p12 }
  0x45   : > { %p1572_p7 = pnand %p1571_p6, %p1565_p1 }
  0x47   : > { %1575 = shalt.err (!%p1572_p7)
}
  0x48   : > { %1412 = dma.hbm_to_vmem [thread:$0]  (!%p1811_p0), %s296_s7, 512, %s298_s8, %s1823_s27, %s2077_s22, %s2077_s22, %s1694_s13  }
  0x49   : > { %315 = sbr.rel (%p1840_p4) target bundleno = 810 (0x32a), region = 36  ;;  %s1881_s10 = sand.u32 (!%p1840_p4), 1, %s1674_s19  }
  0x4a   : > { %s1884_s12 = sshll.u32 (!%p1840_p4), %s1881_s10, 5  ;;  %s318_s29 = scalar_lea.sflag (!%p1840_p4), [#allocation3], %s1881_s10 }
  0x4b   : > { %s321_s25 = scalar_lea.vmem (!%p1840_p4), [#allocation2], %s1884_s12 }
  0x4e   : > { %1653 = dma.done.wait (%p1784_p8), %s318_s29, 512  }
  0x4f   : > { %1655 = vsyncadd (%p1784_p8), %s318_s29, 4294966784  ;;  %s326_s7 = sand.u32 1, %s1764_s24   ;;  %s330_s27 = scalar_lea.vmem [#allocation5], %s1884_s12 }
  0x50   : > { %s327_s11 = scalar_lea.sflag [#allocation6], %s326_s7 }
  0x51   : > { %1657 = dma.done.wait (%p1784_p8), %s327_s11, 1024  }
  0x52   : > { %1659 = vsyncadd (%p1784_p8), %s327_s11, 4294966272  ;;  %v1697_v0 = vmov 0.0   ;;  %vm1698_vm0 = vmmov 0   ;;  %vm415_vm1 = vcmask 261120   ;;  %v400_v1 = vld [vmem:[%s330_s27] sm:$0xff]  ;;  %v401_v3 = vld [vmem:[%s330_s27 + $0x8] sm:$0xff] }
  0x53   : > { %1353 = vmatprep.subr.mxu0 %v1697_v0  ;;  %1355 = vmatprep.mubr.msk.f32.mxu0 %vm1698_vm0, %v1697_v0  ;;  %v392_v2 = vld [vmem:[%s321_s25] sm:$0xff]  ;;  %v393_v5 = vld [vmem:[%s321_s25 + $0x8] sm:$0xff]  ;;  %v394_v6 = vld [vmem:[%s321_s25 + $0x10] sm:$0xff]  ;;  %p387_p8 = scmp.lt.s32.totalorder %s1682_s21, 1  ;;  %vm720_vm2 = vcmask 64512   ;;  %s339_s17 = scalar_lea.vmem [#allocation7], %s1884_s12 }
  0x54   : > { %1358 = vmatprep.subr.mxu1 %v1697_v0  ;;  %1360 = vmatprep.mubr.msk.f32.mxu1 %vm1698_vm0, %v1697_v0  ;;  %v396_v4 = vmul.f32 0.17677669, %v392_v2  ;;  %v402_v7 = vld [vmem:[%s330_s27 + $0x10] sm:$0xff]  ;;  %v397_v8 = vmul.f32 0.17677669, %v393_v5  ;;  %v395_v9 = vld [vmem:[%s321_s25 + $0x18] sm:$0xff] }
  0x55   : > { %1354 = vmatpush3.xpose.msk.msra.mxu0 %vm415_vm1, %v400_v1  ;;  %1359 = vmatpush3.xpose.msk.msra.mxu1 %vm415_vm1, %v401_v3  ;;  %v403_v10 = vld [vmem:[%s330_s27 + $0x18] sm:$0xff]  ;;  %v398_v11 = vmul.f32 0.17677669, %v394_v6  ;;  %v399_v12 = vmul.f32 0.17677669, %v395_v9  ;;  %s388_s24 = scalar_select %p387_p8, %s1682_s21, 1 }
  0x56   : > { %1363 = vmatprep.subr.mxu0 %v1697_v0  ;;  %1368 = vmatprep.subr.mxu1 %v1697_v0  ;;  %v404_v50 = vld [vmem:[%s339_s17] sm:$0xff]  ;;  %v405_v51 = vld [vmem:[%s339_s17 + $0x8] sm:$0xff]  ;;  %v406_v58 = vld [vmem:[%s339_s17 + $0x10] sm:$0xff]  ;;  %s383_s22 = scalar_lea.vmem [#allocation9], %s1884_s12  ;;  %s1335_s26 = sshll.u32 %s1682_s21, 9 }
  0x57   : > { %s389_s9 = scalar_lea.vmem %s2053_s3, %s388_s24  ;;  %v407_v62 = vld [vmem:[%s339_s17 + $0x18] sm:$0xff]  ;;  %s1106_s8 = sshll.u32 %s383_s22, 4  ;;  %s1961_s8 = int_to_ptr.vmem [resolvable:$true] %s1106_s8 }
  0x58   : > { %1356 = vmatmul.mubr.msk.f32.vlgmr.msra.gmra.mxu0 %vm415_vm1, %v396_v4  ;;  %1361 = vmatmul.mubr.msk.f32.vlgmr.msra.gmra.mxu1 %vm415_vm1, %v397_v8  ;;  %v1311_v13 = vld [vmem:[%s389_s9] ss:$0 sm:$0xff]  ;;  %s1959_s14 = scalar_lea.hbm %s2055_s5, %s1335_s26  ;;  %s1071_s16 = scalar_lea.sflag [#allocation10], %s1881_s10 }
  0x59   : > { %1364 = vmatpush3.xpose.msk.msra.mxu0 %vm415_vm1, %v402_v7  ;;  %1365 = vmatprep.mubr.msk.f32.mxu0 %vm1698_vm0, %v1697_v0  ;;  %s1576_s1 = scalar_lea.vmem %s1961_s8, 512  ;;  %s1699_s18 = smov [#allocation9]  }
  0x5a   : > { %1369 = vmatpush3.xpose.msk.msra.mxu1 %vm415_vm1, %v403_v10  ;;  %1370 = vmatprep.mubr.msk.f32.mxu1 %vm1698_vm0, %v1697_v0  ;;  %p1577_p0 = scmp.ne.s32.totalorder %s1961_s8, %s1576_s1  ;;  %s1580_s29 = sshll.u32 %s1699_s18, 4  ;;  %s1581_s29 = int_to_ptr.vmem [resolvable:$false] %s1580_s29 }
  0x5b   : > { %1373 = vmatprep.subr.mxu0 %v1697_v0  ;;  %1378 = vmatprep.subr.mxu1 %v1697_v0  ;;  %s1582_s25 = scalar_lea.vmem %s1581_s29, 1024  ;;  %p1583_p10 = scmp.lt.s32.totalorder %s1961_s8, %s1581_s29 }
  0x5c   : > { %1366 = vmatmul.mubr.msk.f32.vlgmr.msra.gmra.mxu0 %vm415_vm1, %v398_v11  ;;  %p1578_p3 = pnand %p1577_p0, %p1788_p9  ;;  %p1584_p13 = scmp.lt.s32.totalorder %s1582_s25, %s1576_s1 }
  0x5d   : > { %1371 = vmatmul.mubr.msk.f32.vlgmr.msra.gmra.mxu1 %vm415_vm1, %v399_v12  ;;  %1375 = vmatprep.mubr.msk.f32.mxu0 %vm1698_vm0, %v1697_v0 }
  0x5e   : > { %1380 = vmatprep.mubr.msk.f32.mxu1 %vm1698_vm0, %v1697_v0  ;;  %1374 = vmatpush3.msra.mxu0 %v404_v50  ;;  %p1579_p4 = pneg %p1578_p3  ;;  %p1585_p12 = por %p1584_p13, %p1583_p10 }
  0x5f   : > { %1383 = vmatprep.subr.mxu0 %v1697_v0  ;;  %1379 = vmatpush3.msra.mxu1 %v405_v51 }
  0x60   : > { %1388 = vmatprep.subr.mxu1 %v1697_v0  ;;  %p1586_p1 = pnand %p1585_p12, %p1579_p4 }
 0x118   : > { %v488_v14 = vpop.f32.mrf.mxu0  ;;  %v564_v15 = vpop.f32.mrf.mxu1 }
 0x119   : > { %v489_v16 = vadd.f32 %v1311_v13, %v488_v14  ;;  %v565_v17 = vadd.f32 %v1311_v13, %v564_v15 }
 0x11a   : > { %v1357_v18 = vpop.f32.mrf.mxu0  ;;  %v1362_v19 = vpop.f32.mrf.mxu1 }
 0x11b   : > { %v721_v20 = vsel %vm720_vm2, %v489_v16, -inf  ;;  %v724_v24 = vsel %vm720_vm2, %v565_v17, -inf }
 0x11c   : > { %722 = vmax.xlane.f32.xlu0 %v721_v20  ;;  %v640_v21 = vpop.f32.mrf.mxu0 }
 0x11d   : > { %v641_v22 = vadd.f32 %v1311_v13, %v640_v21  ;;  %v716_v23 = vpop.f32.mrf.mxu1 }
 0x11e   : > { %v1367_v25 = vpop.f32.mrf.mxu0  ;;  %v717_v26 = vadd.f32 %v1311_v13, %v716_v23 }
 0x11f   : > { %v727_v27 = vsel %vm720_vm2, %v641_v22, -inf  ;;  %v1372_v28 = vpop.f32.mrf.mxu1 }
 0x120   : > { %725 = vmax.xlane.f32.xlu0 %v724_v24  ;;  %728 = vmax.xlane.f32.xlu1 %v727_v27  ;;  %v730_v29 = vsel %vm720_vm2, %v717_v26, -inf }
 0x124   : > { %731 = vmax.xlane.f32.xlu1 %v730_v29 }
 0x1a5   : > { %v723_v30 = vpop.xlane.xlu0 %722 }
 0x1a6   : > { %v733_v31 = vsub.f32 %v489_v16, %v723_v30 }
 0x1a8   : > { %v737_v32 = vmul.f32 1.442695, %v733_v31 }
 0x1a9   : > { %v726_v33 = vpop.xlane.xlu0 %725  ;;  %v729_v34 = vpop.xlane.xlu1 %728 }
 0x1aa   : > { %1476 = vpow2.f32 %v737_v32  ;;  %v734_v35 = vsub.f32 %v565_v17, %v726_v33  ;;  %v735_v36 = vsub.f32 %v641_v22, %v729_v34 }
 0x1ac   : > { %v739_v37 = vmul.f32 1.442695, %v734_v35  ;;  %v741_v38 = vmul.f32 1.442695, %v735_v36 }
 0x1ad   : > { %v732_v39 = vpop.xlane.xlu1 %731 }
 0x1ae   : > { %1478 = vpow2.f32 %v739_v37  ;;  %v736_v40 = vsub.f32 %v717_v26, %v732_v39 }
 0x1af   : > { %1480 = vpow2.f32 %v741_v38 }
 0x1b0   : > { %v743_v41 = vmul.f32 1.442695, %v736_v40 }
 0x1b2   : > { %1482 = vpow2.f32 %v743_v41 }
 0x1b7   : > { %v1477_v42 = vpop.eup %1476 }
 0x1b8   : > { %v745_v43 = vsel %vm720_vm2, %v1477_v42, 0.0 }
 0x1b9   : > { %746 = vadd.xlane.f32.xlu0 %v745_v43 }
 0x1bb   : > { %v1479_v44 = vpop.eup %1478 }
 0x1bc   : > { %v1481_v45 = vpop.eup %1480  ;;  %v748_v46 = vsel %vm720_vm2, %v1479_v44, 0.0 }
 0x1bd   : > { %749 = vadd.xlane.f32.xlu1 %v748_v46  ;;  %v751_v47 = vsel %vm720_vm2, %v1481_v45, 0.0 }
 0x1be   : > { %752 = vadd.xlane.f32.xlu0 %v751_v47 }
 0x1bf   : > { %v1483_v48 = vpop.eup %1482 }
 0x1c0   : > { %v754_v49 = vsel %vm720_vm2, %v1483_v48, 0.0 }
 0x1c1   : > { %755 = vadd.xlane.f32.xlu1 %v754_v49 }
 0x242   : > { %v747_v52 = vpop.xlane.xlu0 %746 }
 0x243   : > { %1484 = vrcp.f32 %v747_v52 }
 0x246   : > { %v750_v53 = vpop.xlane.xlu1 %749 }
 0x247   : > { %v753_v54 = vpop.xlane.xlu0 %752  ;;  %1486 = vrcp.f32 %v750_v53 }
 0x248   : > { %1488 = vrcp.f32 %v753_v54 }
 0x24a   : > { %v756_v55 = vpop.xlane.xlu1 %755 }
 0x24b   : > { %1490 = vrcp.f32 %v756_v55 }
 0x250   : > { %v1485_v56 = vpop.eup %1484 }
 0x251   : > { %v761_v57 = vmul.f32 %v1485_v56, %v1477_v42 }
 0x253   : > { %1376 = vmatmul.mubr.msk.f32.vlgmr.msra.gmra.mxu0 %vm720_vm2, %v761_v57  ;;  %1061 = vst.msk [vmem:[%s383_s22] sm:$0xff] %vm720_vm2, %v761_v57 }
 0x254   : > { %v1487_v59 = vpop.eup %1486  ;;  %1384 = vmatpush3.msra.mxu0 %v406_v58  ;;  %1385 = vmatprep.mubr.msk.f32.mxu0 %vm1698_vm0, %v1697_v0 }
 0x255   : > { %v1489_v60 = vpop.eup %1488  ;;  %v762_v61 = vmul.f32 %v1487_v59, %v1479_v44 }
 0x256   : > { %v763_v63 = vmul.f32 %v1489_v60, %v1481_v45 }
 0x257   : > { %1381 = vmatmul.mubr.msk.f32.vlgmr.msra.gmra.mxu1 %vm720_vm2, %v762_v61  ;;  %1062 = vst.msk [vmem:[%s383_s22 + $0x8] sm:$0xff] %vm720_vm2, %v762_v61 }
 0x258   : > { %v1491_v1 = vpop.eup %1490  ;;  %1386 = vmatmul.mubr.msk.f32.vlgmr.msra.gmra.mxu0 %vm720_vm2, %v763_v63  ;;  %1063 = vst.msk [vmem:[%s383_s22 + $0x10] sm:$0xff] %vm720_vm2, %v763_v63  ;;  %1389 = vmatpush3.msra.mxu1 %v407_v62 }
 0x259   : > { %1390 = vmatprep.mubr.msk.f32.mxu1 %vm1698_vm0, %v1697_v0  ;;  %v764_v2 = vmul.f32 %v1491_v1, %v1483_v48 }
 0x25b   : > { %1391 = vmatmul.mubr.msk.f32.vlgmr.msra.gmra.mxu1 %vm720_vm2, %v764_v2  ;;  %1064 = vst.msk [vmem:[%s383_s22 + $0x18] sm:$0xff] %vm720_vm2, %v764_v2 }
 0x25c   : > { %1589 = shalt.err (!%p1586_p1)
}
 0x25d   : > { %s1590_s7 = scalar_lea.hbm %s1959_s14, 512  ;;  %s1594_s24 = scalar_lea.hbm %s2055_s5, 1024 }
 0x25e   : > { %p1591_p2 = scmp.ne.s32.totalorder %s1959_s14, %s1590_s7  ;;  %p1595_p7 = scmp.lt.s32.totalorder %s1959_s14, %s2055_s5 }
 0x25f   : > { %p1596_p8 = scmp.lt.s32.totalorder %s1594_s24, %s1590_s7 }
 0x260   : > { %p1592_p5 = pnand %p1591_p2, %p1788_p9 }
 0x261   : > { %p1597_p0 = por %p1596_p8, %p1595_p7 }
 0x262   : > { %p1593_p6 = pneg %p1592_p5 }
 0x264   : > { %p1598_p3 = pnand %p1597_p0, %p1593_p6 }
 0x266   : > { %1601 = shalt.err (!%p1598_p3)
}
 0x267   : > { %s1700_s9 = smov 128   ;;  %s1701_s17 = smov 8  }
 0x268   : > { %1400 = dma.vmem_to_hbm [thread:$0]  (%p1788_p9), %s1961_s8, 512, %s1959_s14, %s1071_s16, %s1700_s9, %s1700_s9, %s1701_s17  }
 0x269   : > { %s376_s22 = scalar_lea.vmem [#allocation8], %s1884_s12  ;;  %s2000_s15 = scalar_lea.hbm %s2054_s4, %s1335_s26 }
 0x26a   : > { %s1087_s28 = sshll.u32 %s376_s22, 4  ;;  %s1066_s14 = scalar_lea.sflag [#allocation4], %s1881_s10  ;;  %s1992_s28 = int_to_ptr.vmem [resolvable:$true] %s1087_s28 }
 0x26b   : > { %s1602_s16 = scalar_lea.vmem %s1992_s28, 512  ;;  %s1702_s1 = smov [#allocation8]  }
 0x26c   : > { %p1603_p4 = scmp.ne.s32.totalorder %s1992_s28, %s1602_s16  ;;  %s1606_s18 = sshll.u32 %s1702_s1, 4  ;;  %s1607_s18 = int_to_ptr.vmem [resolvable:$false] %s1606_s18 }
 0x26d   : > { %s1608_s29 = scalar_lea.vmem %s1607_s18, 1024  ;;  %p1609_p12 = scmp.lt.s32.totalorder %s1992_s28, %s1607_s18 }
 0x26e   : > { %p1604_p10 = pnand %p1603_p4, %p1788_p9  ;;  %p1610_p1 = scmp.lt.s32.totalorder %s1608_s29, %s1602_s16 }
 0x270   : > { %p1605_p13 = pneg %p1604_p10  ;;  %p1611_p2 = por %p1610_p1, %p1609_p12 }
 0x272   : > { %p1612_p5 = pnand %p1611_p2, %p1605_p13 }
 0x313   : > { %v834_v0 = vpop.f32.mrf.mxu0 }
 0x314   : > { %1057 = vst.msk [vmem:[%s376_s22] sm:$0xff] %vm415_vm1, %v834_v0 }
 0x315   : > { %v1377_v3 = vpop.f32.mrf.mxu0 }
 0x317   : > { %v907_v4 = vpop.f32.mrf.mxu1 }
 0x318   : > { %1058 = vst.msk [vmem:[%s376_s22 + $0x8] sm:$0xff] %vm415_vm1, %v907_v4  ;;  %v980_v5 = vpop.f32.mrf.mxu0 }
 0x319   : > { %1059 = vst.msk [vmem:[%s376_s22 + $0x10] sm:$0xff] %vm415_vm1, %v980_v5  ;;  %v1382_v6 = vpop.f32.mrf.mxu1 }
 0x31a   : > { %v1387_v7 = vpop.f32.mrf.mxu0 }
 0x31b   : > { %v1053_v8 = vpop.f32.mrf.mxu1 }
 0x31c   : > { %1060 = vst.msk [vmem:[%s376_s22 + $0x18] sm:$0xff] %vm415_vm1, %v1053_v8 }
 0x31d   : > { %v1392_v9 = vpop.f32.mrf.mxu1 }
 0x31e   : > { %1615 = shalt.err (!%p1612_p5)
}
 0x31f   : > { %s1616_s21 = scalar_lea.hbm %s2000_s15, 512  ;;  %s1620_s25 = scalar_lea.hbm %s2054_s4, 1024 }
 0x320   : > { %p1617_p6 = scmp.ne.s32.totalorder %s2000_s15, %s1616_s21  ;;  %p1621_p0 = scmp.lt.s32.totalorder %s2000_s15, %s2054_s4 }
 0x321   : > { %p1622_p3 = scmp.lt.s32.totalorder %s1620_s25, %s1616_s21 }
 0x322   : > { %p1618_p7 = pnand %p1617_p6, %p1788_p9 }
 0x323   : > { %p1623_p4 = por %p1622_p3, %p1621_p0 }
 0x324   : > { %p1619_p8 = pneg %p1618_p7 }
 0x326   : > { %p1624_p10 = pnand %p1623_p4, %p1619_p8 }
 0x328   : > { %1627 = shalt.err (!%p1624_p10)
}
 0x329   : > { %1399 = dma.vmem_to_hbm [thread:$0]  (%p1788_p9), %s1992_s28, 512, %s2000_s15, %s1066_s14, %s1700_s9, %s1700_s9, %s1701_s17  }
 0x32a PF: > { %s2078_s27 = sld [smem:[#allocation15_spill]]  ;;  %p2080_p13 = scmp.ge.s32.totalorder %s1690_s23, 2 }
 0x32c   : > { %p1414_p12 = pnand %p2080_p13, %p1795_p11 }
 0x32e   : > { %p1415_p1 = pneg %p1414_p12 }
 0x330   : > { %s1121_s30 = sand.u32 1, %s2078_s27  }
 0x331   : > { %s1122_s13 = scalar_lea.sflag [#allocation4], %s1121_s30 }
 0x332   : > { %1661 = dma.done.wait (%p1415_p1), %s1122_s13, 512  }
 0x333   : > { %1663 = vsyncadd (%p1415_p1), %s1122_s13, 4294966784  ;;  %s1131_s22 = scalar_lea.sflag [#allocation10], %s1121_s30 }
 0x334   : > { %1665 = dma.done.wait (%p1415_p1), %s1131_s22, 512  }
 0x335   : > { %1667 = vsyncadd (%p1415_p1), %s1131_s22, 4294966784  ;;  %s28_s23 = sadd.s32 1, %s1690_s23   ;;  %s2081_s6 = sld [smem:[#allocation18_spill]] }
 0x336   : > { %p25_p2 = scmp.ge.s32.totalorder %s28_s23, 4   ;;  %s2082_s21 = sld [smem:[#allocation16_spill]] }
 0x337   : > { %s2083_s22 = sld [smem:[#allocation17_spill]]  ;;  %s2084_s18 = smov %s1674_s19 }
 0x338   : > { %s2085_s19 = smov %s1678_s20  ;;  %27 = sbr.rel (!%p25_p2) target bundleno = 12 (0xc), region = 125 }
 0x33b   : > { %s2086_s20 = smov %s2081_s6 }
 0x33d   :  { %1136 = vsyncpa [#allocation3], 1 }
 0x33e   :  { %1138 = vsyncpa [#allocation3 + $0x1], 1 }
 0x33f   :  { %1139 = vsyncpa [#allocation6], 1 }
 0x340   :  { %1141 = vsyncpa [#allocation6 + $0x1], 1 }
 0x341   :  { %1142 = vsyncpa [#allocation4], 1 }
 0x342   :  { %1144 = vsyncpa [#allocation4 + $0x1], 1 }
 0x343   :  { %1145 = vsyncpa [#allocation10], 1 }
 0x344   :  { %1147 = vsyncpa [#allocation10 + $0x1], 1 }

</bundles_post_ra>
